<compile_context>
chip_gen: v7x
topology: tpu7x:2x2x1
jax: 0.10.0
libtpu: 0.0.40
codegen_flags: <defaults>
</compile_context>

<pallas_src>
import functools

import jax
import jax.numpy as jnp
from jax import lax
from jax.experimental import pallas as pl
from jax.experimental.pallas import tpu as pltpu


def _idetect_level_kernel(x_ref, w_ref, tbl_ref, *out_refs,
                          W, stride, TM, emit_pre):
    """Fused folded-1x1-conv + sigmoid decode for one (batch, M-tile) block.

    Shapes inside the kernel:
      x_ref   : (C, TM)  f32   activations, spatial on lanes (cast to bf16 here)
      w_ref   : (N, C)   bf16  weight * ImplicitM (folded)
      tbl_ref : (N, 8)   f32   packed per-output-row decode table
                               [beff, scale, off, selx, sely, is_wh, anchor, 0]
      out_refs: (pre (N,TM) bf16 if emit_pre, dec (N,TM) f32)
    """
    if emit_pre:
        pre_ref, dec_ref = out_refs
    else:
        (dec_ref,) = out_refs

    # In-kernel bf16 cast (cheap VPU op hidden under DMA; avoids a wrapper pass).
    x = x_ref[...].astype(w_ref.dtype)

    tbl = tbl_ref[...]
    beff = tbl[:, 0:1]
    scale = tbl[:, 1:2]
    off_c = tbl[:, 2:3]
    selx = tbl[:, 3:4]
    sely = tbl[:, 4:5]
    mwh = tbl[:, 5:6]
    anch = tbl[:, 6:7]

    # 1x1 conv (ImplicitA/bias/ImplicitM already folded): MXU matmul, f32 acc.
    pre = jnp.dot(w_ref[...], x, preferred_element_type=jnp.float32) + beff
    if emit_pre:
        pre_ref[...] = pre.astype(pre_ref.dtype)

    # Grid coordinates generated in-kernel (no DMA): flat col j = h*W + w.
    col = (pl.program_id(1) * TM
           + lax.broadcasted_iota(jnp.int32, (1, TM), 1)).astype(jnp.float32)
    gy_i = jnp.floor(col / W)            # exact for these magnitudes (f32)
    gx = (col - gy_i * W) * stride       # stride * grid_x, (1, TM)
    gy = gy_i * stride                   # stride * grid_y, (1, TM)

    # Decode (eval path).  Per row n = a*no + c:
    #   c in {0,1}: (sig*2 - 0.5 + g)*stride  ->  sig*(2*stride) + (g - 0.5)*stride
    #   c in {2,3}: (sig*2)^2 * anchor
    #   else      : sig
    # Exact divide kept for decode precision; on v5e pl.reciprocal(approx=True)
    # would free VALU slots at a small accuracy cost.
    sig = 1.0 / (1.0 + jnp.exp(-pre))
    t = sig * scale + (off_c + selx * gx + sely * gy)
    dec = jnp.where(mwh != 0.0, t * t * anch, t)
    dec_ref[...] = dec.astype(dec_ref.dtype)


def _fold_params(weight, bias, ia, im):
    """weff = W*im (per row), beff = (bias + W@ia)*im  -- exact, == IDetect.fuse()."""
    N, C = weight.shape[0], weight.shape[1]
    w2 = weight.reshape(N, C).astype(jnp.float32)
    ia = ia.astype(jnp.float32)
    im = im.astype(jnp.float32)
    bias = bias.astype(jnp.float32)
    weff = w2 * im[:, None]
    beff = (bias + w2 @ ia) * im
    return weff, beff


def _choose_tile(m, max_tile=2048):
    """Lane tile: split M into cdiv(M, max_tile) blocks, rounded up to a 128
    multiple.  Ragged last block is handled by Pallas masking."""
    nb = pl.cdiv(m, max_tile)
    tm = pl.cdiv(m, nb)
    return ((tm + 127) // 128) * 128


def idetect_level(x_nchw, weight, bias, ia, im, anchors_l, stride, nc,
                  compute_dtype=jnp.bfloat16, raw_dtype=jnp.bfloat16,
                  return_raw=True, max_tile=2048):
    """One detection level.

    anchors_l must be the pixel-space anchor_grid values (as in the model cfg),
    NOT the stride-normalized `self.anchors` buffer.

    Returns (x_out (B,na,H,W,no) or None, z (B,na*H*W,no)).
    """
    B, C, H, W = x_nchw.shape
    na = anchors_l.shape[0]
    no = nc + 5
    N = na * no
    M = H * W
    TM = _choose_tile(M, max_tile)
    num_m = pl.cdiv(M, TM)
    stride = float(stride)
    f32 = jnp.float32

    # ---- trace-time parameter folding & packed decode table ----
    weff, beff = _fold_params(weight, bias, ia, im)
    w_in = weff.astype(compute_dtype)                 # (N, C) bf16
    x_cm = x_nchw.reshape(B, C, M)                    # free reshape, stays f32

    c_idx = jnp.arange(N) % no                        # output index within no
    a_idx = jnp.arange(N) // no                       # anchor index
    is_x = c_idx == 0
    is_y = c_idx == 1
    is_xy = is_x | is_y
    is_wh = (c_idx == 2) | (c_idx == 3)
    scale = jnp.where(is_xy, 2.0 * stride, jnp.where(is_wh, 2.0, 1.0))
    off_c = jnp.where(is_xy, -0.5 * stride, 0.0)
    anch = jnp.where(c_idx == 2, anchors_l[a_idx, 0],
                     jnp.where(c_idx == 3, anchors_l[a_idx, 1], 1.0))
    tbl = jnp.stack([beff, scale, off_c,
                     is_x.astype(f32), is_y.astype(f32), is_wh.astype(f32),
                     anch, jnp.zeros((N,), f32)], axis=1).astype(f32)   # (N, 8)

    kernel = functools.partial(_idetect_level_kernel,
                               W=W, stride=stride, TM=TM, emit_pre=return_raw)

    out_spec = pl.BlockSpec((None, N, TM), lambda b, m: (b, 0, m))
    out_specs, out_shape = [], []
    if return_raw:
        out_specs.append(out_spec)
        out_shape.append(jax.ShapeDtypeStruct((B, N, M), raw_dtype))
    out_specs.append(out_spec)
    out_shape.append(jax.ShapeDtypeStruct((B, N, M), jnp.float32))

    outs = pl.pallas_call(
        kernel,
        grid=(B, num_m),
        in_specs=[
            pl.BlockSpec((None, C, TM), lambda b, m: (b, 0, m)),  # x (f32)
            pl.BlockSpec((N, C), lambda b, m: (0, 0)),            # folded weight
            pl.BlockSpec((N, 8), lambda b, m: (0, 0)),            # decode table
        ],
        out_specs=out_specs,
        out_shape=out_shape,
        compiler_params=pltpu.CompilerParams(
            dimension_semantics=("parallel", "parallel")),
    )(x_cm, w_in, tbl)

    if return_raw:
        pre, dec = outs
        # Same permute the module does; only materialized when raw x is wanted.
        x_out = jnp.transpose(pre.reshape(B, na, no, H, W), (0, 1, 3, 4, 2))
    else:
        (dec,) = outs
        x_out = None
    # Downstream consumers that can index (B, N, M) directly should do so and
    # skip this transpose; it is kept here to match the module's z layout.
    z = jnp.transpose(dec.reshape(B, na, no, M), (0, 1, 3, 2)).reshape(B, na * M, no)
    return x_out, z


def idetect_forward(xs, weights, biases, ias, ims, anchors, strides, nc,
                    return_raw=True):
    """Inference-mode IDetect.forward: returns (cat(z, 1), [x_i])."""
    x_outs, zs = [], []
    for i in range(len(xs)):
        xo, z = idetect_level(xs[i], weights[i], biases[i], ias[i], ims[i],
                              anchors[i], float(strides[i]), nc,
                              return_raw=return_raw)
        x_outs.append(xo)
        zs.append(z)
    return jnp.concatenate(zs, axis=1), x_outs


# ---------------- pure-JAX reference (for correctness check) ----------------
def reference_level(x_nchw, weight, bias, ia, im, anchors_l, stride, nc,
                    compute_dtype=jnp.bfloat16):
    B, C, H, W = x_nchw.shape
    na = anchors_l.shape[0]
    no = nc + 5
    weff, beff = _fold_params(weight, bias, ia, im)
    y = jnp.einsum("bchw,oc->bohw",
                   x_nchw.astype(compute_dtype), weff.astype(compute_dtype),
                   preferred_element_type=jnp.float32)
    y = y + beff.reshape(1, -1, 1, 1)
    x_out = jnp.transpose(y.reshape(B, na, no, H, W), (0, 1, 3, 4, 2))
    sig = 1.0 / (1.0 + jnp.exp(-x_out))
    yv, xv = jnp.meshgrid(jnp.arange(H), jnp.arange(W), indexing="ij")
    grid = jnp.stack((xv, yv), axis=2).reshape(1, 1, H, W, 2).astype(jnp.float32)
    xy = (sig[..., 0:2] * 2.0 - 0.5 + grid) * stride
    wh = (sig[..., 2:4] * 2.0) ** 2 * anchors_l.reshape(1, na, 1, 1, 2)
    dec = jnp.concatenate([xy, wh, sig[..., 4:]], axis=-1)
    return x_out, dec.reshape(B, -1, no)


if __name__ == "__main__":
    key = jax.random.PRNGKey(0)

    # Module config (small, consistent with IDetect(nc, anchors, ch)):
    nc = 3                                   # -> no = 8
    anchors_flat = jnp.array([[12, 16, 19, 36, 40, 28],
                              [36, 75, 76, 55, 72, 146],
                              [142, 110, 192, 243, 459, 401]], dtype=jnp.float32)
    nl = anchors_flat.shape[0]
    na = anchors_flat.shape[1] // 2
    anchors = anchors_flat.reshape(nl, na, 2)   # pixel-space anchor_grid values
    no = nc + 5
    ch = (16, 32, 64)
    strides = (8.0, 16.0, 32.0)                 # self.stride (set by parent model)
    B = 2
    spatial = (16, 8, 4)

    # Deterministic parameter init (Conv2d 1x1 weight/bias, ImplicitA, ImplicitM).
    keys = jax.random.split(key, 5 * nl)
    xs, weights, biases, ias, ims = [], [], [], [], []
    for i in range(nl):
        kx, kw, kb, ka, km = keys[5 * i: 5 * i + 5]
        H = Wd = spatial[i]
        xs.append(jax.random.normal(kx, (B, ch[i], H, Wd), jnp.float32))
        weights.append(0.05 * jax.random.normal(kw, (na * no, ch[i], 1, 1), jnp.float32))
        biases.append(0.05 * jax.random.normal(kb, (na * no,), jnp.float32))
        ias.append(0.02 * jax.random.normal(ka, (ch[i],), jnp.float32))          # ImplicitA ~ N(0,.02)
        ims.append(1.0 + 0.02 * jax.random.normal(km, (na * no,), jnp.float32))  # ImplicitM ~ N(1,.02)

    # Run Pallas kernels.
    z_cat, x_outs = idetect_forward(xs, weights, biases, ias, ims, anchors, strides, nc)
    jax.block_until_ready(z_cat)
    for xo in x_outs:
        jax.block_until_ready(xo)

    # Reference check (same bf16 matmul inputs; fold is algebraically exact).
    ref_zs, ok = [], True
    for i in range(nl):
        rx, rz = reference_level(xs[i], weights[i], biases[i], ias[i], ims[i],
                                 anchors[i], strides[i], nc)
        ref_zs.append(rz)
        # raw head output is stored in bf16 -> looser tolerance
        ok &= bool(jnp.allclose(x_outs[i].astype(jnp.float32), rx,
                                rtol=2e-2, atol=2e-2))
    ref_z_cat = jnp.concatenate(ref_zs, axis=1)
    ok &= bool(jnp.allclose(z_cat, ref_z_cat, rtol=5e-3, atol=5e-3))

    assert z_cat.shape == (B, na * sum(s * s for s in spatial), no)
    assert x_outs[0].shape == (B, na, spatial[0], spatial[0], no)
    assert ok, "Pallas IDetect output mismatch vs reference"
    print("KERNEL_OK")
</pallas_src>

<mosaic_0001>
module attributes {stable_mosaic.version = 11 : i64} {
  func.func @_idetect_level_kernel(%arg0: i32, %arg1: i32, %arg2: memref<1x16x256xf32, #tpu.memory_space<vmem>>, %arg3: memref<24x16xbf16, #tpu.memory_space<vmem>>, %arg4: memref<24x8xf32, #tpu.memory_space<vmem>>, %arg5: memref<1x24x256xbf16, #tpu.memory_space<vmem>>, %arg6: memref<1x24x256xf32, #tpu.memory_space<vmem>>) attributes {dimension_semantics = [#tpu.dimension_semantics<parallel>, #tpu.dimension_semantics<parallel>], iteration_bounds = array<i64: 2, 1>, scalar_prefetch = 0 : i64, scratch_operands = 0 : i64, tpu.core_type = #tpu.core_type<tc>, window_params = [{transform_indices = @transform_0, window_bounds = array<i64: 1, 16, 256>}, {pipeline_mode = #tpu.pipeline_mode<synchronous>, transform_indices = @transform_1, window_bounds = array<i64: 24, 16>}, {pipeline_mode = #tpu.pipeline_mode<synchronous>, transform_indices = @transform_2, window_bounds = array<i64: 24, 8>}, {transform_indices = @transform_3, window_bounds = array<i64: 1, 24, 256>}, {transform_indices = @transform_4, window_bounds = array<i64: 1, 24, 256>}]} {
    %c0 = arith.constant 0 : index
    %c0_0 = arith.constant 0 : index
    %c0_1 = arith.constant 0 : index
    %0 = vector.load %arg2[%c0, %c0_0, %c0_1] : memref<1x16x256xf32, #tpu.memory_space<vmem>>, vector<1x16x256xf32>
    %1 = vector.shape_cast %0 : vector<1x16x256xf32> to vector<16x256xf32>
    %2 = arith.truncf %1 : vector<16x256xf32> to vector<16x256xbf16>
    %c0_2 = arith.constant 0 : index
    %c0_3 = arith.constant 0 : index
    %3 = vector.load %arg4[%c0_2, %c0_3] : memref<24x8xf32, #tpu.memory_space<vmem>>, vector<24x8xf32>
    %4 = vector.extract_strided_slice %3 {offsets = [0, 0], sizes = [24, 1], strides = [1, 1]} : vector<24x8xf32> to vector<24x1xf32>
    %5 = vector.extract_strided_slice %3 {offsets = [0, 1], sizes = [24, 1], strides = [1, 1]} : vector<24x8xf32> to vector<24x1xf32>
    %6 = vector.extract_strided_slice %3 {offsets = [0, 2], sizes = [24, 1], strides = [1, 1]} : vector<24x8xf32> to vector<24x1xf32>
    %7 = vector.extract_strided_slice %3 {offsets = [0, 3], sizes = [24, 1], strides = [1, 1]} : vector<24x8xf32> to vector<24x1xf32>
    %8 = vector.extract_strided_slice %3 {offsets = [0, 4], sizes = [24, 1], strides = [1, 1]} : vector<24x8xf32> to vector<24x1xf32>
    %9 = vector.extract_strided_slice %3 {offsets = [0, 5], sizes = [24, 1], strides = [1, 1]} : vector<24x8xf32> to vector<24x1xf32>
    %10 = vector.extract_strided_slice %3 {offsets = [0, 6], sizes = [24, 1], strides = [1, 1]} : vector<24x8xf32> to vector<24x1xf32>
    %c0_4 = arith.constant 0 : index
    %c0_5 = arith.constant 0 : index
    %11 = vector.load %arg3[%c0_4, %c0_5] : memref<24x16xbf16, #tpu.memory_space<vmem>>, vector<24x16xbf16>
    %cst = arith.constant dense<0.000000e+00> : vector<24x256xf32>
    %12 = tpu.matmul %11, %2, %cst {dimension_numbers = #tpu.dot_dimension_numbers<[1], [0], [0], [1], [0, 0, 1, 1], [], []>} : vector<24x16xbf16>, vector<16x256xbf16>, vector<24x256xf32> -> vector<24x256xf32>
    %13 = vector.broadcast %4 : vector<24x1xf32> to vector<24x256xf32>
    %14 = arith.addf %12, %13 : vector<24x256xf32>
    %15 = arith.truncf %14 : vector<24x256xf32> to vector<24x256xbf16>
    %c0_6 = arith.constant 0 : index
    %c0_7 = arith.constant 0 : index
    %c0_8 = arith.constant 0 : index
    %16 = vector.load %arg5[%c0_6, %c0_7, %c0_8] : memref<1x24x256xbf16, #tpu.memory_space<vmem>>, vector<1x24x256xbf16>
    %17 = vector.shape_cast %16 : vector<1x24x256xbf16> to vector<24x256xbf16>
    %18 = vector.shape_cast %15 : vector<24x256xbf16> to vector<1x24x256xbf16>
    tpu.vector_store %arg5[%c0_6, %c0_7, %c0_8], %18 {strides = array<i32>} : memref<1x24x256xbf16, #tpu.memory_space<vmem>>, vector<1x24x256xbf16>,
    %c256_i32 = arith.constant 256 : i32
    %19 = arith.muli %arg1, %c256_i32 : i32
    %20 = tpu.iota {dimensions = array<i32: 1>} : vector<1x256xi32>
    %21 = vector.broadcast %19 : i32 to vector<1x256xi32>
    %22 = arith.addi %21, %20 : vector<1x256xi32>
    %23 = arith.sitofp %22 : vector<1x256xi32> to vector<1x256xf32>
    %cst_9 = arith.constant 1.600000e+01 : f32
    %24 = vector.broadcast %cst_9 : f32 to vector<1x256xf32>
    %25 = arith.divf %23, %24 : vector<1x256xf32>
    %26 = math.floor %25 : vector<1x256xf32>
    %cst_10 = arith.constant 1.600000e+01 : f32
    %27 = vector.broadcast %cst_10 : f32 to vector<1x256xf32>
    %28 = arith.mulf %26, %27 : vector<1x256xf32>
    %29 = arith.subf %23, %28 : vector<1x256xf32>
    %cst_11 = arith.constant 8.000000e+00 : f32
    %30 = vector.broadcast %cst_11 : f32 to vector<1x256xf32>
    %31 = arith.mulf %29, %30 : vector<1x256xf32>
    %cst_12 = arith.constant 8.000000e+00 : f32
    %32 = vector.broadcast %cst_12 : f32 to vector<1x256xf32>
    %33 = arith.mulf %26, %32 : vector<1x256xf32>
    %cst_13 = arith.constant 0.000000e+00 : f32
    %34 = vector.broadcast %cst_13 : f32 to vector<24x256xf32>
    %35 = arith.subf %34, %14 : vector<24x256xf32>
    %36 = math.exp %35 : vector<24x256xf32>
    %cst_14 = arith.constant 1.000000e+00 : f32
    %37 = vector.broadcast %cst_14 : f32 to vector<24x256xf32>
    %38 = arith.addf %37, %36 : vector<24x256xf32>
    %cst_15 = arith.constant 1.000000e+00 : f32
    %39 = vector.broadcast %cst_15 : f32 to vector<24x256xf32>
    %40 = arith.divf %39, %38 : vector<24x256xf32>
    %41 = vector.broadcast %5 : vector<24x1xf32> to vector<24x256xf32>
    %42 = arith.mulf %40, %41 : vector<24x256xf32>
    %43 = vector.broadcast %7 : vector<24x1xf32> to vector<24x256xf32>
    %44 = vector.broadcast %31 : vector<1x256xf32> to vector<24x256xf32>
    %45 = arith.mulf %43, %44 : vector<24x256xf32>
    %46 = vector.broadcast %6 : vector<24x1xf32> to vector<24x256xf32>
    %47 = arith.addf %46, %45 : vector<24x256xf32>
    %48 = vector.broadcast %8 : vector<24x1xf32> to vector<24x256xf32>
    %49 = vector.broadcast %33 : vector<1x256xf32> to vector<24x256xf32>
    %50 = arith.mulf %48, %49 : vector<24x256xf32>
    %51 = arith.addf %47, %50 : vector<24x256xf32>
    %52 = arith.addf %42, %51 : vector<24x256xf32>
    %cst_16 = arith.constant 0.000000e+00 : f32
    %53 = vector.broadcast %cst_16 : f32 to vector<24x1xf32>
    %54 = arith.cmpf one, %9, %53 : vector<24x1xf32>
    %55 = arith.mulf %52, %52 : vector<24x256xf32>
    %56 = vector.broadcast %10 : vector<24x1xf32> to vector<24x256xf32>
    %57 = arith.mulf %55, %56 : vector<24x256xf32>
    %58 = vector.shape_cast %54 : vector<24x1xi1> to vector<24x1xi1>
    %59 = vector.broadcast %58 : vector<24x1xi1> to vector<24x256xi1>
    %60 = arith.select %59, %57, %52 : vector<24x256xi1>, vector<24x256xf32>
    %c0_17 = arith.constant 0 : index
    %c0_18 = arith.constant 0 : index
    %c0_19 = arith.constant 0 : index
    %61 = vector.load %arg6[%c0_17, %c0_18, %c0_19] : memref<1x24x256xf32, #tpu.memory_space<vmem>>, vector<1x24x256xf32>
    %62 = vector.shape_cast %61 : vector<1x24x256xf32> to vector<24x256xf32>
    %63 = vector.shape_cast %60 : vector<24x256xf32> to vector<1x24x256xf32>
    tpu.vector_store %arg6[%c0_17, %c0_18, %c0_19], %63 {strides = array<i32>} : memref<1x24x256xf32, #tpu.memory_space<vmem>>, vector<1x24x256xf32>,
    return
  }
  func.func @transform_0(%arg0: i32, %arg1: i32) -> (i32, i32, i32) {
    %c0_i32 = arith.constant 0 : i32
    %c0_i32_0 = arith.constant 0 : i32
    return %arg0, %c0_i32, %arg1 : i32, i32, i32
  }
  func.func @transform_1(%arg0: i32, %arg1: i32) -> (i32, i32) {
    %c0_i32 = arith.constant 0 : i32
    %c0_i32_0 = arith.constant 0 : i32
    %c0_i32_1 = arith.constant 0 : i32
    return %c0_i32, %c0_i32_0 : i32, i32
  }
  func.func @transform_2(%arg0: i32, %arg1: i32) -> (i32, i32) {
    %c0_i32 = arith.constant 0 : i32
    %c0_i32_0 = arith.constant 0 : i32
    %c0_i32_1 = arith.constant 0 : i32
    return %c0_i32, %c0_i32_0 : i32, i32
  }
  func.func @transform_3(%arg0: i32, %arg1: i32) -> (i32, i32, i32) {
    %c0_i32 = arith.constant 0 : i32
    %c0_i32_0 = arith.constant 0 : i32
    return %arg0, %c0_i32, %arg1 : i32, i32, i32
  }
  func.func @transform_4(%arg0: i32, %arg1: i32) -> (i32, i32, i32) {
    %c0_i32 = arith.constant 0 : i32
    %c0_i32_0 = arith.constant 0 : i32
    return %arg0, %c0_i32, %arg1 : i32, i32, i32
  }
}

</mosaic_0001>

<bundles_post_ra>
// kernel: tpu_custom_call.1
= control target key start
LH: loop header
LB: loop body
LE: loop exit
PB: predicated region body
PF: predicated region fallthrough
CT: control target
= control target key end

     0   :  { %10 = vsyncpa [#allocation3], 0  ;;  %s1375_s0 = inlined_call_operand.hbm [shape: f32[2,16,256], index: 0, kind: input, shape index: {}]   ;;  %s1376_s1 = inlined_call_operand.vmem [shape: bf16[24,16], index: 1, kind: input, shape index: {}]   ;;  %s1377_s2 = inlined_call_operand.vmem [shape: f32[24,8], index: 2, kind: input, shape index: {}]   ;;  %s1378_s3 = inlined_call_operand.hbm [shape: bf16[2,24,256], index: 3, kind: output, shape index: {0}]   ;;  %s1379_s4 = inlined_call_operand.hbm [shape: f32[2,24,256], index: 4, kind: output, shape index: {1}]  }
   0x1   :  { %12 = vsyncpa [#allocation3 + $0x1], 0 }
   0x2   :  { %13 = vsyncpa [#allocation4], 0 }
   0x3   :  { %15 = vsyncpa [#allocation4 + $0x1], 0 }
   0x4   :  { %16 = vsyncpa [#allocation7], 0 }
   0x5   :  { %18 = vsyncpa [#allocation7 + $0x1], 0  ;;  %s1061_s15 = smov 0   ;;  %s1063_s16 = smov 0  }
   0x6   :  { %s1065_s17 = smov 0   ;;  %s1067_s18 = smov 0  }
   0x7   :  { %s1069_s19 = smov 0   ;;  %s1071_s20 = smov 0  }
   0x8 LB: > { %s724_s21 = sadd.s32 4294967295, %s1018_s20   ;;  %s725_s22 = sadd.s32 4294967294, %s1018_s20   ;;  %s1018_s20 = sphi %s1071_s20, %s24_s20   ;;  %s1014_s19 = sphi %s1069_s19, %s1394_s19   ;;  %s1010_s18 = sphi %s1067_s18, %s1393_s18   ;;  %s1006_s17 = sphi %s1065_s17, %s1392_s17   ;;  %s1002_s16 = sphi %s1063_s16, %s1391_s16   ;;  %s998_s15 = sphi %s1061_s15, %s1390_s15  }
   0x9   : > { %s36_s23 = sadd.s32 1, %s1014_s19  ;;  %s45_s24 = sadd.s32 1, %s1006_s17 }
   0xa   : > { %p38_p0 = scmp.ge.s32.totalorder %s36_s23, 2  ;;  %p52_p1 = scmp.ne.s32.totalorder %s1006_s17, %s1002_s16 }
   0xb   : > { %p53_p2 = scmp.eq.s32.totalorder %s1018_s20, 0  ;;  %p58_p3 = scmp.ne.s32.totalorder %s1002_s16, %s998_s15 }
   0xc   : > { %s1396_s23 = smov (%p38_p0, %s36_s23), 0  ;;  %p59_p5 = scmp.eq.s32.totalorder %s724_s21, 0 }
   0xd   : > { %p1102_p4 = por %p53_p2, %p52_p1  ;;  %s40_s26 = ssub.s32 %s1014_s19, %s1396_s23 }
   0xe   : > { %p126_p6 = scmp.eq.s32.totalorder %s724_s21, 1  ;;  %p43_p7 = scmp.eq.s32.totalorder %s40_s26, 0 }
   0xf   : > { %p1108_p8 = por %p59_p5, %p58_p3  ;;  %p132_p10 = scmp.eq.s32.totalorder %s725_s22, 1 }
  0x10   : > { %p1112_p9 = por %p126_p6, %p52_p1  ;;  %p771_p13 = scmp.lt.s32.totalorder %s1018_s20, 2 }
  0x11   : > { %s1117_s29 = scalar_select %p43_p7, %s1006_s17, %s45_s24  }
  0x12   : > { %s1383_s28 = scalar_select %p1112_p9, 1, 0 }
  0x13   : > { %p1119_p11 = por %p132_p10, %p58_p3  ;;  %s186_s5 = sand.u32 1, %s1006_s17  }
  0x14   : > { %s728_s6 = sshll.u32 %s186_s5, 5  ;;  %s744_s7 = sshll.u32 %s1014_s19, 9 }
  0x15   : > { %s1384_s30 = scalar_select %p1119_p11, 1, 0 }
  0x16   : > { %s1130_s10 = scalar_lea.hbm %s1375_s0, %s744_s7  ;;  %s190_s11 = scalar_lea.vmem [#allocation2], %s728_s6 }
  0x17   : > { %s199_s12 = sshll.u32 %s190_s11, 4  ;;  %p1136_p0 = pnand %p771_p13, %p1102_p4  ;;  %s1132_s12 = int_to_ptr.vmem [resolvable:$true] %s199_s12 }
  0x18   : > { %s1141_s14 = scalar_lea.sflag [#allocation3], %s186_s5  ;;  %s874_s21 = scalar_lea.hbm %s1130_s10, 512 }
  0x19   : > { %p875_p2 = scmp.ne.s32.totalorder %s1130_s10, %s874_s21  ;;  %p876_p3 = pneg %p1136_p0 }
  0x1a   : > { %s879_s25 = scalar_lea.hbm %s1375_s0, 1024  ;;  %p880_p4 = scmp.lt.u32.totalorder %s1130_s10, %s1375_s0 }
  0x1b   : > { %p877_p5 = pnand %p876_p3, %p875_p2  ;;  %p881_p7 = scmp.lt.u32.totalorder %s879_s25, %s874_s21 }
  0x1c   : > { %p883_p13 = scmp.lt.u32.totalorder %s874_s21, %s1130_s10 }
  0x1d   : > { %p878_p6 = pneg %p877_p5  ;;  %p882_p10 = por %p881_p7, %p880_p4 }
  0x1f   : > { %p884_p12 = por %p883_p13, %p882_p10 }
  0x21   : > { %p885_p1 = pnand %p884_p12, %p878_p6 }
  0x23   : > { %888 = shalt.err (!%p885_p1)
}
  0x24   : > { %s889_s5 = scalar_lea.vmem %s1132_s12, 512  ;;  %s1020_s7 = smov [#allocation2]  }
  0x25   : > { %p890_p2 = scmp.ne.s32.totalorder %s1132_s12, %s889_s5  ;;  %s894_s8 = sshll.u32 %s1020_s7, 4  ;;  %s895_s8 = int_to_ptr.vmem [resolvable:$false] %s894_s8 }
  0x26   : > { %s896_s9 = scalar_lea.vmem %s895_s8, 1024  ;;  %p897_p9 = scmp.lt.s32.totalorder %s1132_s12, %s895_s8 }
  0x27   : > { %p892_p5 = pnand %p890_p2, %p876_p3  ;;  %p898_p4 = scmp.lt.s32.totalorder %s896_s9, %s889_s5 }
  0x29   : > { %p893_p11 = pneg %p892_p5  ;;  %p899_p7 = por %p898_p4, %p897_p9 }
  0x2b   : > { %p900_p10 = pnand %p899_p7, %p893_p11 }
  0x2d   : > { %903 = shalt.err (!%p900_p10)
}
  0x2e   : > { %s1021_s11 = smov 256   ;;  %s1022_s21 = smov 16  }
  0x2f   : > { %763 = dma.hbm_to_vmem [thread:$0]  (!%p1136_p0), %s1130_s10, 512, %s1132_s12, %s1141_s14, %s1021_s11, %s1021_s11, %s1022_s21  }
  0x30   : > { %p207_p12 = scmp.lt.s32.totalorder %s1018_s20, 3  ;;  %p1386_p1 = scmp.ge.s32.totalorder %s1018_s20, 1 }
  0x32   : > { %p208_p3 = pnand %p1386_p1, %p207_p12 }
  0x33   : > { %s1173_s22 = sand.u32 (!%p208_p3), 1, %s1002_s16  }
  0x34   : > { %211 = sbr.rel (%p208_p3) target bundleno = 350 (0x15e), region = 32  ;;  %s732_s24 = sshll.u32 (!%p208_p3), %s1173_s22, 5 }
  0x35   : > { %s214_s25 = scalar_lea.sflag (!%p208_p3), [#allocation3], %s1173_s22  ;;  %s217_s26 = scalar_lea.vmem (!%p208_p3), [#allocation2], %s732_s24 }
  0x3b   : > { %985 = dma.done.wait (%p1108_p8), %s214_s25, 512  }
  0x3c   : > { %987 = vsyncadd (%p1108_p8), %s214_s25, 4294966784  ;;  %v1023_v0 = vmov 0   ;;  %v252_v1 = vld [vmem:[%s217_s26 + $0x8] sm:$0xff]  ;;  %v254_v2 = vld [vmem:[%s217_s26 + $0x18] sm:$0xff]  ;;  %vm286_vm0 = vcmask 130048   ;;  %v1024_v12 = vmov 3   ;;  %v368_v25 = vlaneseq }
  0x3d   : > { %325 = vmatprep.mubr.bf16.mxu0 %v1023_v0  ;;  %335 = vmatprep.mubr.bf16.mxu1 %v1023_v0  ;;  %v251_v3 = vld [vmem:[%s217_s26] sm:$0xff]  ;;  %v256_v4 = vpack.c.bf16 %v254_v2, %v252_v1  ;;  %v253_v5 = vld [vmem:[%s217_s26 + $0x10] sm:$0xff]  ;;  %v849_v8 = vld [vmem:[%s1376_s1 + $0x8] ss:$0 sps:$4 sm:$0xff]   ;;  %v1025_v13 = vmov 2   ;;  %v1026_v14 = vmov 4  }
  0x3e   : > { %835 = vset.pattern.permute.xlu1 %v1023_v0  ;;  %834 = vset.pattern.permute.xlu0 %v1023_v0  ;;  %v255_v6 = vpack.c.bf16 %v253_v5, %v251_v3  ;;  %v848_v7 = vld [vmem:[%s1376_s1] sm:$0xff]   ;;  %v259_v9 = vld [vmem:[%s1377_s2 + $0x10] sm:$0xff]  ;;  %v258_v11 = vld [vmem:[%s1377_s2 + $0x8] sm:$0xff]  ;;  %v1027_v15 = vmov 1   ;;  %v1028_v16 = vmov 6   ;;  %v1029_v18 = vmov 5  }
  0x3f   : > { %293 = vmatprep.subr.bf16.mxu0 %v256_v4  ;;  %748 = vmatprep.subr.bf16.mxu1 %v256_v4  ;;  %v257_v10 = vld [vmem:[%s1377_s2] sm:$0xff]  ;;  %vm510_vm1 = vcmp.ne.f32.partialorder %v258_v11, 0.0  ;;  %vm511_vm3 = vcmp.ne.f32.partialorder %v259_v9, 0.0  ;;  %v1211_v27 = vand.u32 127, %v368_v25  ;;  %s750_s11 = smul.u32 24, %s1173_s22  ;;  %s564_s12 = scalar_lea.sflag [#allocation4], %s1173_s22 }
  0x40   : > { %294 = vmatpush1.bf16.msra.mxu0 %v255_v6  ;;  %749 = vmatpush1.bf16.msra.mxu1 %v255_v6  ;;  %v537_v17 = vsel %vm510_vm1, 1, %v1023_v0  ;;  %vm509_vm2 = vcmp.ne.f32.partialorder %v257_v10, 0.0  ;;  %v538_v20 = vsel %vm511_vm3, 1, %v1023_v0  ;;  %s752_s25 = smul.u32 384, %s1010_s18  ;;  %p1387_p9 = scmp.ne.s32.totalorder %s1383_s28, 0 }
  0x41   : > { %275 = vperm.xlu1 %835, %v259_v9   ;;  %265 = vperm.xlu0 %834, %v257_v10   ;;  %v536_v19 = vsel %vm509_vm2, 1, %v1023_v0  ;;  %v1216_v30 = vadd.s32 128, %v1211_v27  ;;  %v374_v31 = vcvt.s32.f32 %v1211_v27  ;;  %s1227_s21 = scalar_lea.vmem [#allocation5], %s750_s11  ;;  %s1030_s14 = smov [#allocation5]  }
  0x42   : > { %s584_s24 = sshll.u32 %s1227_s21, 4  ;;  %s1245_s27 = scalar_lea.hbm %s1378_s3, %s752_s25  ;;  %s1237_s24 = int_to_ptr.vmem [resolvable:$true] %s584_s24 }
  0x43   : > { %735 = vmatmul.mubr.msk.bf16.vlgmr.msra.gmra.mrb[0].mxu0 %vm286_vm0, %v848_v7  ;;  %736 = vmatmul.mubr.msk.bf16.vlgmr.msra.gmra.mrb[0].mxu1 %vm286_vm0, %v849_v8  ;;  %v375_v32 = vcvt.s32.f32 %v1216_v30  ;;  %v1225_v41 = vmul.f32 0.0625, %v374_v31  ;;  %s904_s13 = scalar_lea.vmem %s1237_s24, 384  ;;  %s908_s6 = sshll.u32 %s1030_s14, 4  ;;  %s909_s6 = int_to_ptr.vmem [resolvable:$false] %s908_s6 }
  0x44   : > { %p905_p8 = scmp.ne.s32.totalorder %s1237_s24, %s904_s13  ;;  %s910_s5 = scalar_lea.vmem %s909_s6, 768 }
  0x45   : > { %836 = vset.pattern.permute.xlu1 %v1024_v12  ;;  %270 = vperm.xlu0 %834, %v258_v11   ;;  %v1233_v46 = vmul.f32 0.0625, %v375_v32  ;;  %v379_v61 = vfloor.f32 %v1225_v41  ;;  %p911_p6 = scmp.lt.s32.totalorder %s1237_s24, %s909_s6  ;;  %p912_p13 = scmp.lt.s32.totalorder %s910_s5, %s904_s13 }
  0x46   : > { %444 = vperm.xlu1 %836, %v257_v10   ;;  %p906_p11 = pnand %p905_p8, %p1387_p9 }
  0x47   : > { %v380_v3 = vfloor.f32 %v1233_v46  ;;  %p913_p2 = por %p912_p13, %p911_p6 }
  0x48   : > { %p907_p0 = pneg %p906_p11 }
  0x49   : > { %837 = vset.pattern.permute.xlu0 %v1024_v12 }
  0x4a   : > { %452 = vperm.xlu1 %836, %v259_v9   ;;  %448 = vperm.xlu0 %837, %v258_v11   ;;  %p914_p5 = pnand %p913_p2, %p907_p0 }
  0x4e   : > { %838 = vset.pattern.permute.xlu1 %v1025_v13  ;;  %839 = vset.pattern.permute.xlu0 %v1025_v13 }
  0x4f   : > { %462 = vperm.xlu1 %838, %v257_v10   ;;  %466 = vperm.xlu0 %839, %v258_v11  }
  0x53   : > { %470 = vperm.xlu1 %838, %v259_v9   ;;  %841 = vset.pattern.permute.xlu0 %v1026_v14 }
  0x54   : > { %484 = vperm.xlu0 %841, %v258_v11  }
  0x57   : > { %840 = vset.pattern.permute.xlu1 %v1026_v14 }
  0x58   : > { %480 = vperm.xlu1 %840, %v257_v10   ;;  %843 = vset.pattern.permute.xlu0 %v1027_v15 }
  0x59   : > { %430 = vperm.xlu0 %843, %v258_v11  }
  0x5c   : > { %488 = vperm.xlu1 %840, %v259_v9  }
  0x5d   : > { %845 = vset.pattern.permute.xlu0 %v1028_v16 }
  0x5e   : > { %523 = vperm.xlu0 %845, %v258_v11  }
  0x60   : > { %842 = vset.pattern.permute.xlu1 %v1027_v15 }
  0x61   : > { %426 = vperm.xlu1 %842, %v257_v10  }
  0x62   : > { %847 = vset.pattern.permute.xlu0 %v1029_v18 }
  0x63   : > { %543 = vperm.xlu0 %847, %v537_v17  }
  0x65   : > { %434 = vperm.xlu1 %842, %v259_v9  }
  0x69   : > { %844 = vset.pattern.permute.xlu1 %v1028_v16 }
  0x6a   : > { %519 = vperm.xlu1 %844, %v257_v10  }
  0x6e   : > { %527 = vperm.xlu1 %844, %v259_v9  }
  0x72   : > { %846 = vset.pattern.permute.xlu1 %v1029_v18 }
  0x73   : > { %540 = vperm.xlu1 %846, %v536_v19  }
  0x77   : > { %546 = vperm.xlu1 %846, %v538_v20  }
  0xc0   : > { %v276_v21 = vpop.permute.xlu1 %275  ;;  %v266_v29 = vpop.permute.xlu0 %265 }
  0xc4   : > { %v271_v34 = vpop.permute.xlu0 %270 }
  0xc5   : > { %v1203_v22 = vpop.permute.xlu1 %444 }
  0xc9   : > { %v1205_v23 = vpop.permute.xlu1 %452  ;;  %v1249_v5 = vpop.permute.xlu0 %448 }
  0xce   : > { %v1207_v24 = vpop.permute.xlu1 %462 }
  0xd2   : > { %v1209_v26 = vpop.permute.xlu1 %470 }
  0xd7   : > { %v1213_v28 = vpop.permute.xlu1 %480 }
  0xdb   : > { %v1221_v33 = vpop.permute.xlu1 %488 }
  0xe0   : > { %v1235_v56 = vpop.permute.xlu1 %426 }
  0xe4   : > { %v1251_v6 = vpop.permute.xlu1 %434 }
 0x116   : > { %v327_v35 = vpop.f32.mrb[0].mxu0  ;;  %v337_v36 = vpop.f32.mrb[0].mxu1 }
 0x117   : > { %v328_v37 = vadd.f32 %v327_v35, %v266_v29  ;;  %v338_v38 = vadd.f32 %v337_v36, %v276_v21  ;;  %v329_v39 = vpop.f32.mrb[1].mxu0  ;;  %v339_v40 = vpop.f32.mrb[1].mxu1 }
 0x118   : > { %v330_v42 = vadd.f32 %v329_v39, %v266_v29  ;;  %v340_v43 = vadd.f32 %v339_v40, %v276_v21  ;;  %v331_v44 = vpop.f32.mrb[2].mxu0  ;;  %v341_v45 = vpop.f32.mrb[2].mxu1 }
 0x119   : > { %v389_v47 = vsub.f32 0.0, %v328_v37  ;;  %v393_v48 = vsub.f32 0.0, %v338_v38  ;;  %v332_v49 = vadd.f32 %v331_v44, %v271_v34  ;;  %v333_v50 = vpop.f32.mrb[3].mxu0  ;;  %v342_v51 = vpop.f32.mrb[3].mxu1 }
 0x11a   : > { %v745_v52 = vpack.c.bf16 %v330_v42, %v328_v37  ;;  %v390_v53 = vsub.f32 0.0, %v330_v42  ;;  %v747_v54 = vpack.c.bf16 %v340_v43, %v338_v38  ;;  %v394_v55 = vsub.f32 0.0, %v340_v43 }
 0x11b   : > { %v395_v57 = vmul.f32 1.442695, %v389_v47  ;;  %v403_v58 = vmul.f32 1.442695, %v393_v48  ;;  %v391_v59 = vsub.f32 0.0, %v332_v49  ;;  %v334_v60 = vadd.f32 %v333_v50, %v271_v34 }
 0x11c   : > { %364 = vst [vmem:[%s1227_s21] sm:$0xff] %v745_v52  ;;  %v397_v62 = vmul.f32 1.442695, %v390_v53  ;;  %366 = vst [vmem:[%s1227_s21 + $0x10] sm:$0xff] %v747_v54  ;;  %v405_v63 = vmul.f32 1.442695, %v394_v55 }
 0x11d   : > { %850 = vpow2.f32 %v395_v57  ;;  %v399_v0 = vmul.f32 1.442695, %v391_v59  ;;  %v746_v1 = vpack.c.bf16 %v334_v60, %v332_v49  ;;  %v392_v2 = vsub.f32 0.0, %v334_v60 }
 0x11e   : > { %852 = vpow2.f32 %v403_v58 }
 0x11f   : > { %854 = vpow2.f32 %v397_v62  ;;  %365 = vst [vmem:[%s1227_s21 + $0x8] sm:$0xff] %v746_v1  ;;  %v401_v4 = vmul.f32 1.442695, %v392_v2 }
 0x120   : > { %856 = vpow2.f32 %v405_v63 }
 0x121   : > { %917 = shalt.err (!%p914_p5)
}
 0x122   : > { %s918_s7 = scalar_lea.hbm %s1245_s27, 384  ;;  %s922_s11 = scalar_lea.hbm %s1378_s3, 768 }
 0x123   : > { %p919_p4 = scmp.ne.s32.totalorder %s1245_s27, %s918_s7  ;;  %p923_p12 = scmp.lt.u32.totalorder %s1245_s27, %s1378_s3 }
 0x124   : > { %p924_p1 = scmp.lt.u32.totalorder %s922_s11, %s918_s7  ;;  %p926_p8 = scmp.lt.u32.totalorder %s918_s7, %s1245_s27 }
 0x125   : > { %p920_p7 = pnand %p919_p4, %p1387_p9 }
 0x126   : > { %p925_p3 = por %p924_p1, %p923_p12 }
 0x127   : > { %p921_p10 = pneg %p920_p7 }
 0x128   : > { %p927_p11 = por %p926_p8, %p925_p3 }
 0x12a   : > { %p928_p0 = pnand %p927_p11, %p921_p10 }
 0x12c   : > { %931 = shalt.err (!%p928_p0)
}
 0x12d   : > { %s1031_s26 = smov 128   ;;  %s1032_s10 = smov 8   ;;  %v381_v7 = vmul.f32 16.0, %v379_v61  ;;  %858 = vpow2.f32 %v399_v0  ;;  %v382_v8 = vmul.f32 16.0, %v380_v3  ;;  %v467_v10 = vpop.permute.xlu0 %466  ;;  %v1283_v11 = vpop.permute.xlu1 %519  ;;  %v388_v39 = vmul.f32 8.0, %v380_v3 }
 0x12e   : > { %756 = dma.vmem_to_hbm [thread:$0]  (%p1387_p9), %s1237_s24, 384, %s1245_s27, %s564_s12, %s1031_s26, %s1031_s26, %s1032_s10   ;;  %860 = vpow2.f32 %v401_v4  ;;  %v851_v12 = vpop.eup %850 }
 0x12f   : > { %v383_v9 = vsub.f32 %v374_v31, %v381_v7  ;;  %v384_v13 = vsub.f32 %v375_v32, %v382_v8  ;;  %v853_v14 = vpop.eup %852  ;;  %v407_v15 = vadd.f32 1.0, %v851_v12  ;;  %v387_v32 = vmul.f32 8.0, %v379_v61  ;;  %s751_s24 = smul.u32 48, %s1173_s22  ;;  %s569_s5 = scalar_lea.sflag [#allocation7], %s1173_s22 }
 0x130   : > { %v855_v16 = vpop.eup %854  ;;  %v411_v18 = vadd.f32 1.0, %v853_v14  ;;  %v492_v49 = vmul.f32 %v1213_v28, %v388_v39  ;;  %v496_v51 = vmul.f32 %v1221_v33, %v388_v39  ;;  %s753_s13 = smul.u32 768, %s1010_s18  ;;  %s1033_s8 = smov [#allocation6]  }
 0x131   : > { %v385_v17 = vmul.f32 8.0, %v383_v9  ;;  %v857_v19 = vpop.eup %856  ;;  %862 = vrcp.f32 %v407_v15  ;;  %v408_v20 = vadd.f32 1.0, %v855_v16  ;;  %v386_v25 = vmul.f32 8.0, %v384_v13  ;;  %v485_v29 = vpop.permute.xlu0 %484  ;;  %s246_s27 = scalar_lea.vmem [#allocation6], %s751_s24  ;;  %s936_s9 = sshll.u32 %s1033_s8, 4  ;;  %s937_s9 = int_to_ptr.vmem [resolvable:$false] %s936_s9 }
 0x132   : > { %864 = vrcp.f32 %v411_v18  ;;  %v412_v27 = vadd.f32 1.0, %v857_v19  ;;  %v1287_v35 = vpop.permute.xlu1 %527  ;;  %v491_v41 = vmul.f32 %v1213_v28, %v387_v32  ;;  %v495_v48 = vmul.f32 %v1221_v33, %v387_v32  ;;  %s602_s12 = sshll.u32 %s246_s27, 4  ;;  %s1326_s6 = scalar_lea.hbm %s1379_s4, %s753_s13  ;;  %s1319_s12 = int_to_ptr.vmem [resolvable:$true] %s602_s12 }
 0x133   : > { %866 = vrcp.f32 %v408_v20  ;;  %v455_v30 = vmul.f32 %v1203_v22, %v385_v17  ;;  %v459_v37 = vmul.f32 %v1205_v23, %v385_v17  ;;  %v456_v38 = vmul.f32 %v1203_v22, %v386_v25  ;;  %s932_s7 = scalar_lea.vmem %s1319_s12, 768  ;;  %s938_s11 = scalar_lea.vmem %s937_s9, 1536 }
 0x134   : > { %868 = vrcp.f32 %v412_v27  ;;  %v460_v42 = vmul.f32 %v1205_v23, %v386_v25  ;;  %v457_v43 = vmul.f32 %v1249_v5, %v385_v17  ;;  %v458_v45 = vmul.f32 %v1249_v5, %v386_v25  ;;  %p933_p6 = scmp.ne.s32.totalorder %s1319_s12, %s932_s7  ;;  %p939_p5 = scmp.lt.s32.totalorder %s1319_s12, %s937_s9 }
 0x135   : > { %v431_v40 = vpop.permute.xlu0 %430  ;;  %v473_v44 = vadd.f32 %v1207_v24, %v455_v30  ;;  %v477_v47 = vadd.f32 %v1209_v26, %v459_v37  ;;  %v474_v46 = vadd.f32 %v1207_v24, %v456_v38  ;;  %v493_v53 = vmul.f32 %v485_v29, %v387_v32  ;;  %p940_p4 = scmp.lt.s32.totalorder %s938_s11, %s932_s7 }
 0x136   : > { %v541_v22 = vpop.permute.xlu1 %540  ;;  %v478_v23 = vadd.f32 %v1209_v26, %v460_v42  ;;  %v475_v52 = vadd.f32 %v467_v10, %v457_v43  ;;  %v476_v57 = vadd.f32 %v467_v10, %v458_v45  ;;  %v494_v59 = vmul.f32 %v485_v29, %v388_v39  ;;  %p934_p13 = pnand %p933_p6, %p1387_p9 }
 0x137   : > { %v859_v21 = vpop.eup %858  ;;  %v497_v55 = vadd.f32 %v491_v41, %v473_v44  ;;  %v501_v62 = vadd.f32 %v495_v48, %v477_v47  ;;  %v498_v63 = vadd.f32 %v492_v49, %v474_v46  ;;  %vm548_vm4 = vcmp.eq.s32.totalorder %v541_v22, 1  ;;  %p941_p7 = por %p940_p4, %p939_p5 }
 0x138   : > { %v861_v31 = vpop.eup %860  ;;  %v409_v34 = vadd.f32 1.0, %v859_v21  ;;  %v502_v1 = vadd.f32 %v496_v51, %v478_v23  ;;  %v499_v2 = vadd.f32 %v493_v53, %v475_v52  ;;  %v500_v9 = vadd.f32 %v494_v59, %v476_v57  ;;  %p935_p2 = pneg %p934_p13 }
 0x139   : > { %v410_v36 = vadd.f32 1.0, %v861_v31  ;;  %v524_v60 = vpop.permute.xlu0 %523 }
 0x13a   : > { %870 = vrcp.f32 %v409_v34  ;;  %v547_v5 = vpop.permute.xlu1 %546  ;;  %p942_p10 = pnand %p941_p7, %p935_p2 }
 0x13b   : > { %872 = vrcp.f32 %v410_v36  ;;  %v863_v50 = vpop.eup %862  ;;  %vm550_vm5 = vcmp.eq.s32.totalorder %v547_v5, 1 }
 0x13c   : > { %v865_v54 = vpop.eup %864  ;;  %v437_v58 = vmul.f32 %v863_v50, %v1235_v56 }
 0x13d   : > { %v867_v61 = vpop.eup %866  ;;  %v441_v24 = vmul.f32 %v865_v54, %v1251_v6  ;;  %v544_v18 = vpop.permute.xlu0 %543 }
 0x13e   : > { %v869_v28 = vpop.eup %868  ;;  %v438_v26 = vmul.f32 %v867_v61, %v1235_v56  ;;  %v503_v0 = vadd.f32 %v497_v55, %v437_v58  ;;  %vm549_vm6 = vcmp.eq.s32.totalorder %v544_v18, 1 }
 0x13f   : > { %v442_v3 = vmul.f32 %v869_v28, %v1251_v6  ;;  %v507_v4 = vadd.f32 %v501_v62, %v441_v24 }
 0x140   : > { %v504_v8 = vadd.f32 %v498_v63, %v438_v26  ;;  %v512_v10 = vmul.f32 %v503_v0, %v503_v0 }
 0x141   : > { %v508_v13 = vadd.f32 %v502_v1, %v442_v3  ;;  %v516_v14 = vmul.f32 %v507_v4, %v507_v4 }
 0x142   : > { %v513_v56 = vmul.f32 %v504_v8, %v504_v8  ;;  %v530_v16 = vmul.f32 %v1283_v11, %v512_v10 }
 0x143   : > { %v517_v19 = vmul.f32 %v508_v13, %v508_v13  ;;  %v534_v6 = vmul.f32 %v1287_v35, %v516_v14 }
 0x144   : > { %v871_v33 = vpop.eup %870  ;;  %v531_v21 = vmul.f32 %v1283_v11, %v513_v56  ;;  %v551_v25 = vsel %vm548_vm4, %v530_v16, %v503_v0 }
 0x145   : > { %v873_v7 = vpop.eup %872  ;;  %v439_v12 = vmul.f32 %v871_v33, %v431_v40  ;;  %v535_v29 = vmul.f32 %v1287_v35, %v517_v19  ;;  %557 = vst [vmem:[%s246_s27] sm:$0xff] %v551_v25  ;;  %v555_v34 = vsel %vm550_vm5, %v534_v6, %v507_v4 }
 0x146   : > { %v440_v15 = vmul.f32 %v873_v7, %v431_v40  ;;  %v552_v30 = vsel %vm548_vm4, %v531_v21, %v504_v8  ;;  %561 = vst [vmem:[%s246_s27 + $0x20] sm:$0xff] %v555_v34 }
 0x147   : > { %v505_v17 = vadd.f32 %v499_v2, %v439_v12  ;;  %558 = vst [vmem:[%s246_s27 + $0x8] sm:$0xff] %v552_v30  ;;  %v556_v36 = vsel %vm550_vm5, %v535_v29, %v508_v13 }
 0x148   : > { %v506_v20 = vadd.f32 %v500_v9, %v440_v15  ;;  %562 = vst [vmem:[%s246_s27 + $0x28] sm:$0xff] %v556_v36 }
 0x149   : > { %v514_v27 = vmul.f32 %v505_v17, %v505_v17 }
 0x14a   : > { %v515_v31 = vmul.f32 %v506_v20, %v506_v20 }
 0x14b   : > { %v532_v32 = vmul.f32 %v524_v60, %v514_v27 }
 0x14c   : > { %v533_v11 = vmul.f32 %v524_v60, %v515_v31 }
 0x14d   : > { %v553_v35 = vsel %vm549_vm6, %v532_v32, %v505_v17 }
 0x14e   : > { %v554_v37 = vsel %vm549_vm6, %v533_v11, %v506_v20  ;;  %559 = vst [vmem:[%s246_s27 + $0x10] sm:$0xff] %v553_v35 }
 0x14f   : > { %560 = vst [vmem:[%s246_s27 + $0x18] sm:$0xff] %v554_v37 }
 0x150   : > { %945 = shalt.err (!%p942_p10)
}
 0x151   : > { %s946_s21 = scalar_lea.hbm %s1326_s6, 768  ;;  %s950_s10 = scalar_lea.hbm %s1379_s4, 1536 }
 0x152   : > { %p947_p12 = scmp.ne.s32.totalorder %s1326_s6, %s946_s21  ;;  %p951_p8 = scmp.lt.u32.totalorder %s1326_s6, %s1379_s4 }
 0x153   : > { %p952_p11 = scmp.lt.u32.totalorder %s950_s10, %s946_s21  ;;  %p954_p6 = scmp.lt.u32.totalorder %s946_s21, %s1326_s6 }
 0x154   : > { %p948_p1 = pnand %p947_p12, %p1387_p9 }
 0x155   : > { %p953_p0 = por %p952_p11, %p951_p8 }
 0x156   : > { %p949_p3 = pneg %p948_p1 }
 0x157   : > { %p955_p13 = por %p954_p6, %p953_p0 }
 0x159   : > { %p956_p2 = pnand %p955_p13, %p949_p3 }
 0x15b   : > { %959 = shalt.err (!%p956_p2)
}
 0x15c   : > { %s1034_s13 = smov 256   ;;  %s1035_s18 = smov 16  }
 0x15d   : > { %757 = dma.vmem_to_hbm [thread:$0]  (%p1387_p9), %s1319_s12, 768, %s1326_s6, %s569_s5, %s1034_s13, %s1034_s13, %s1035_s18  }
 0x15e PF: > { %s617_s14 = sand.u32 1, %s998_s15   ;;  %p1388_p5 = scmp.ne.s32.totalorder %s1384_s30, 0 }
 0x15f   : > { %p1389_p4 = scmp.ge.s32.totalorder %s1018_s20, 2  ;;  %s618_s7 = scalar_lea.sflag [#allocation4], %s617_s14 }
 0x161   : > { %p765_p7 = pnand %p1389_p4, %p1388_p5 }
 0x163   : > { %989 = dma.done.wait (!%p765_p7), %s618_s7, 384  }
 0x164   : > { %991 = vsyncadd (!%p765_p7), %s618_s7, 4294966912  ;;  %s627_s8 = scalar_lea.sflag [#allocation7], %s617_s14 }
 0x165   : > { %993 = dma.done.wait (!%p765_p7), %s627_s8, 768  }
 0x166   : > { %995 = vsyncadd (!%p765_p7), %s627_s8, 4294966528  ;;  %s24_s20 = sadd.s32 1, %s1018_s20   ;;  %s1390_s15 = smov %s1002_s16 }
 0x167   : > { %p21_p10 = scmp.ge.s32.totalorder %s24_s20, 4   ;;  %s1391_s16 = smov %s1006_s17 }
 0x168   : > { %s1392_s17 = smov %s1117_s29  ;;  %s1393_s18 = smov %s1014_s19 }
 0x169   : > { %s1394_s19 = smov %s1396_s23  ;;  %23 = sbr.rel (!%p21_p10) target bundleno = 8 (0x8), region = 94 }
 0x170   :  { %632 = vsyncpa [#allocation3], 1 }
 0x171   :  { %634 = vsyncpa [#allocation3 + $0x1], 1 }
 0x172   :  { %635 = vsyncpa [#allocation4], 1 }
 0x173   :  { %637 = vsyncpa [#allocation4 + $0x1], 1 }
 0x174   :  { %638 = vsyncpa [#allocation7], 1 }
 0x175   :  { %640 = vsyncpa [#allocation7 + $0x1], 1 }

</bundles_post_ra>
